<compile_context>
chip_gen: v7x
topology: tpu7x:2x2x1
jax: 0.10.0
libtpu: 0.0.40
codegen_flags: <defaults>
</compile_context>

<pallas_src>
import functools

import jax
import jax.numpy as jnp
from jax import lax
from jax.experimental import pallas as pl
from jax.experimental.pallas import tpu as pltpu

GAMMA_NEG = 4.0  # must stay 4 for the two-squarings weight below
GAMMA_POS = 1.0  # must stay 1 for the select weight below
CLIP = 0.05
EPS = 1e-8


def _round_up(n, m):
    return ((n + m - 1) // m) * m


def _sublane_align(dtype):
    # packed sublane multiple: 8 rows for 32-bit, 16 for 16-bit, 32 for 8-bit
    itemsize = jnp.dtype(dtype).itemsize
    return 8 * max(1, 4 // itemsize)


@functools.lru_cache(maxsize=None)
def _vmem_capacity_bytes():
    try:
        return int(pltpu.get_tpu_info().vmem_capacity_bytes)
    except Exception:
        return 64 * 1024 * 1024  # conservative (v7x-sized) fallback


def _asl_kernel(x_ref, y_ref, out_ref, *, n_rows, tile_n):
    i = pl.program_id(0)

    x = x_ref[...].astype(jnp.float32)
    y = y_ref[...].astype(jnp.float32)

    xs_pos = jax.nn.sigmoid(x)                        # EUP
    xs_neg = jnp.minimum((1.0 - xs_pos) + CLIP, 1.0)  # clipped negative prob

    is_pos = y > 0.5

    # Fused log path (binary labels): select the relevant probability once,
    # take a single log (EPS clamp also keeps garbage tail values finite-ish;
    # the row mask below drops them via select, so NaNs cannot leak in).
    p = jnp.where(is_pos, xs_pos, xs_neg)
    base = jnp.log(jnp.maximum(p, EPS))               # EUP

    # Focusing weight (1 - pt)^gamma: exact for binary y with gamma_pos=1,
    # gamma_neg=4 -> select + two squarings, no pow/exp/log on the EUP.
    one_m_neg = 1.0 - xs_neg
    neg_sq = one_m_neg * one_m_neg
    w = jnp.where(is_pos, 1.0 - xs_pos, neg_sq * neg_sq)

    contrib = base * w

    # Mask tail rows of the last (partial) tile: OOB rows hold undefined data,
    # so use a select (not multiply-by-zero) to drop them.
    rows = lax.broadcasted_iota(jnp.int32, contrib.shape, 0)
    valid = (i * tile_n + rows) < n_rows
    contrib = jnp.where(valid, contrib, 0.0)

    # One partial sum per tile, written to a fully (8,128)-aligned block so the
    # store is unmasked and each grid step owns a distinct output block.
    partial = -jnp.sum(contrib)
    out_ref[...] = jnp.full(out_ref.shape, partial, dtype=out_ref.dtype)


def asymmetric_loss(x, y, *, max_tile_n=None):
    """ASL forward. x: (N, C) logits (f32/bf16), y: (N, C) binary targets
    (f32 / bf16 / int8 / bool). Returns the scalar loss twice, matching the
    PyTorch module's `(-loss.sum(), -loss.sum())`."""
    N, C = x.shape
    assert y.shape == (N, C)

    bx = jnp.dtype(x.dtype).itemsize
    by = jnp.dtype(y.dtype).itemsize
    align = max(_sublane_align(x.dtype), _sublane_align(y.dtype))

    # Generation-aware VMEM budgeting: v5e/v6e report 128 MiB/core, v7x 64 MiB.
    vmem_cap = _vmem_capacity_bytes()
    vmem_limit = min((vmem_cap * 3) // 4, 96 * 1024 * 1024)
    budget = vmem_limit // 2  # 2 inputs x 2 pipeline buffers <= half the limit

    row_bytes = 2 * C * (bx + by)  # both inputs, double-buffered
    tile_n = max(align, (budget // max(row_bytes, 1)) // align * align)
    tile_n = min(tile_n, _round_up(N, align))
    if max_tile_n is not None:
        tile_n = min(tile_n, max(align, (max_tile_n // align) * align))

    num_tiles = pl.cdiv(N, tile_n)

    kernel = functools.partial(_asl_kernel, n_rows=N, tile_n=tile_n)

    partials = pl.pallas_call(
        kernel,
        out_shape=jax.ShapeDtypeStruct((num_tiles, 8, 128), jnp.float32),
        grid_spec=pltpu.PrefetchScalarGridSpec(
            num_scalar_prefetch=0,
            grid=(num_tiles,),
            in_specs=[
                pl.BlockSpec((tile_n, C), lambda i: (i, 0)),
                pl.BlockSpec((tile_n, C), lambda i: (i, 0)),
            ],
            out_specs=pl.BlockSpec((1, 8, 128), lambda i: (i, 0, 0)),
        ),
        compiler_params=pltpu.CompilerParams(
            dimension_semantics=("parallel",),  # independent tiles; v7x dual-TC
            vmem_limit_bytes=vmem_limit,
        ),
    )(x, y)

    total = jnp.sum(partials[:, 0, 0])
    return total, total


def _asl_reference(x, y):
    xs_pos = jax.nn.sigmoid(x)
    xs_neg = jnp.minimum(1.0 - xs_pos + CLIP, 1.0)
    los_pos = y * jnp.log(jnp.maximum(xs_pos, EPS))
    los_neg = (1.0 - y) * jnp.log(jnp.maximum(xs_neg, EPS))
    loss = los_pos + los_neg
    pt = xs_pos * y + xs_neg * (1.0 - y)
    gamma = GAMMA_POS * y + GAMMA_NEG * (1.0 - y)
    loss = loss * jnp.power(1.0 - pt, gamma)
    return -jnp.sum(loss)


if __name__ == "__main__":
    key = jax.random.PRNGKey(0)
    kx, ky = jax.random.split(key)
    N, C = 16, 128  # (batch, num_classes)
    x = jax.random.normal(kx, (N, C), dtype=jnp.float32)
    y = (jax.random.uniform(ky, (N, C)) > 0.5).astype(jnp.float32)

    loss_a, loss_b = asymmetric_loss(x, y)
    jax.block_until_ready(loss_a)

    ref = _asl_reference(x, y)
    assert jnp.allclose(loss_a, ref, rtol=2e-5, atol=1e-4), (loss_a, ref)
    assert jnp.allclose(loss_b, ref, rtol=2e-5, atol=1e-4)

    # Non-multiple batch + forced multi-tile grid: exercises the in-kernel tail
    # mask and the parallel per-tile partial-sum path.
    x2 = jax.random.normal(kx, (20, C), dtype=jnp.float32)
    y2 = (jax.random.uniform(ky, (20, C)) > 0.5).astype(jnp.float32)
    la, _ = asymmetric_loss(x2, y2, max_tile_n=8)
    jax.block_until_ready(la)
    assert jnp.allclose(la, _asl_reference(x2, y2), rtol=2e-5, atol=1e-4)

    # Narrow dtypes: bf16 logits + int8 targets (kernel upcasts in-register).
    x3 = x.astype(jnp.bfloat16)
    y3 = y.astype(jnp.int8)
    lb, _ = asymmetric_loss(x3, y3)
    jax.block_until_ready(lb)
    ref_bf = _asl_reference(x3.astype(jnp.float32), y)
    assert jnp.allclose(lb, ref_bf, rtol=2e-5, atol=1e-4), (lb, ref_bf)

    print("KERNEL_OK")
</pallas_src>

<mosaic_0001>
module attributes {stable_mosaic.version = 11 : i64} {
  func.func @_asl_kernel(%arg0: i32, %arg1: memref<16x128xf32, #tpu.memory_space<vmem>>, %arg2: memref<16x128xf32, #tpu.memory_space<vmem>>, %arg3: memref<1x8x128xf32, #tpu.memory_space<vmem>>) attributes {dimension_semantics = [#tpu.dimension_semantics<parallel>], iteration_bounds = array<i64: 1>, scalar_prefetch = 0 : i64, scratch_operands = 0 : i64, tpu.core_type = #tpu.core_type<tc>, window_params = [{transform_indices = @transform_0, window_bounds = array<i64: 16, 128>}, {transform_indices = @transform_1, window_bounds = array<i64: 16, 128>}, {transform_indices = @transform_2, window_bounds = array<i64: 1, 8, 128>}]} {
    %c0 = arith.constant 0 : index
    %c0_0 = arith.constant 0 : index
    %0 = vector.load %arg1[%c0, %c0_0] : memref<16x128xf32, #tpu.memory_space<vmem>>, vector<16x128xf32>
    %c0_1 = arith.constant 0 : index
    %c0_2 = arith.constant 0 : index
    %1 = vector.load %arg2[%c0_1, %c0_2] : memref<16x128xf32, #tpu.memory_space<vmem>>, vector<16x128xf32>
    %2 = arith.negf %0 : vector<16x128xf32>
    %3 = math.exp %2 : vector<16x128xf32>
    %cst = arith.constant 1.000000e+00 : f32
    %4 = vector.broadcast %cst : f32 to vector<16x128xf32>
    %5 = arith.addf %4, %3 : vector<16x128xf32>
    %6 = arith.divf %4, %5 : vector<16x128xf32>
    %cst_3 = arith.constant 1.000000e+00 : f32
    %7 = vector.broadcast %cst_3 : f32 to vector<16x128xf32>
    %8 = arith.subf %7, %6 : vector<16x128xf32>
    %cst_4 = arith.constant 5.000000e-02 : f32
    %9 = vector.broadcast %cst_4 : f32 to vector<16x128xf32>
    %10 = arith.addf %8, %9 : vector<16x128xf32>
    %cst_5 = arith.constant 1.000000e+00 : f32
    %11 = vector.broadcast %cst_5 : f32 to vector<16x128xf32>
    %12 = arith.minimumf %10, %11 : vector<16x128xf32>
    %cst_6 = arith.constant 5.000000e-01 : f32
    %13 = vector.broadcast %cst_6 : f32 to vector<16x128xf32>
    %14 = arith.cmpf ogt, %1, %13 : vector<16x128xf32>
    %15 = arith.select %14, %6, %12 : vector<16x128xi1>, vector<16x128xf32>
    %cst_7 = arith.constant 9.99999993E-9 : f32
    %16 = vector.broadcast %cst_7 : f32 to vector<16x128xf32>
    %17 = arith.maximumf %15, %16 : vector<16x128xf32>
    %18 = math.log %17 : vector<16x128xf32>
    %cst_8 = arith.constant 1.000000e+00 : f32
    %19 = vector.broadcast %cst_8 : f32 to vector<16x128xf32>
    %20 = arith.subf %19, %12 : vector<16x128xf32>
    %21 = arith.mulf %20, %20 : vector<16x128xf32>
    %cst_9 = arith.constant 1.000000e+00 : f32
    %22 = vector.broadcast %cst_9 : f32 to vector<16x128xf32>
    %23 = arith.subf %22, %6 : vector<16x128xf32>
    %24 = arith.mulf %21, %21 : vector<16x128xf32>
    %25 = arith.select %14, %23, %24 : vector<16x128xi1>, vector<16x128xf32>
    %26 = arith.mulf %18, %25 : vector<16x128xf32>
    %27 = tpu.iota {dimensions = array<i32: 0>} : vector<16x128xi32>
    %c16_i32 = arith.constant 16 : i32
    %28 = arith.muli %arg0, %c16_i32 : i32
    %29 = vector.broadcast %28 : i32 to vector<16x128xi32>
    %30 = arith.addi %29, %27 : vector<16x128xi32>
    %c16_i32_10 = arith.constant 16 : i32
    %31 = vector.broadcast %c16_i32_10 : i32 to vector<16x128xi32>
    %32 = arith.cmpi slt, %30, %31 : vector<16x128xi32>
    %cst_11 = arith.constant 0.000000e+00 : f32
    %33 = vector.broadcast %cst_11 : f32 to vector<16x128xf32>
    %34 = arith.select %32, %26, %33 : vector<16x128xi1>, vector<16x128xf32>
    %35 = vector.shape_cast %34 : vector<16x128xf32> to vector<1x16x128xf32>
    %cst_12 = arith.constant dense<0.000000e+00> : vector<1xf32>
    %36 = vector.multi_reduction <add>, %35, %cst_12 [1, 2] : vector<1x16x128xf32> to vector<1xf32>
    %37 = vector.shape_cast %36 : vector<1xf32> to vector<1x1x1xf32>
    %38 = vector.extract %37[0, 0, 0] : f32 from vector<1x1x1xf32>
    %cst_13 = arith.constant 0.000000e+00 : f32
    %39 = arith.subf %cst_13, %38 : f32
    %40 = vector.broadcast %39 : f32 to vector<1x8x128xf32>
    %c0_14 = arith.constant 0 : index
    %c0_15 = arith.constant 0 : index
    %c0_16 = arith.constant 0 : index
    %41 = vector.load %arg3[%c0_14, %c0_15, %c0_16] : memref<1x8x128xf32, #tpu.memory_space<vmem>>, vector<1x8x128xf32>
    tpu.vector_store %arg3[%c0_14, %c0_15, %c0_16], %40 {strides = array<i32>} : memref<1x8x128xf32, #tpu.memory_space<vmem>>, vector<1x8x128xf32>,
    return
  }
  func.func @transform_0(%arg0: i32) -> (i32, i32) {
    %c0_i32 = arith.constant 0 : i32
    %c0_i32_0 = arith.constant 0 : i32
    return %arg0, %c0_i32 : i32, i32
  }
  func.func @transform_1(%arg0: i32) -> (i32, i32) {
    %c0_i32 = arith.constant 0 : i32
    %c0_i32_0 = arith.constant 0 : i32
    return %arg0, %c0_i32 : i32, i32
  }
  func.func @transform_2(%arg0: i32) -> (i32, i32, i32) {
    %c0_i32 = arith.constant 0 : i32
    %c0_i32_0 = arith.constant 0 : i32
    %c0_i32_1 = arith.constant 0 : i32
    return %arg0, %c0_i32, %c0_i32_0 : i32, i32, i32
  }
}

</mosaic_0001>

<bundles_post_ra>
// kernel: tpu_custom_call.1
= control target key start
LH: loop header
LB: loop body
LE: loop exit
PB: predicated region body
PF: predicated region fallthrough
CT: control target
= control target key end

     0   :  { %7 = vsyncpa [#allocation3], 0  ;;  %s275_s0 = inlined_call_operand.hbm [shape: f32[16,128], index: 0, kind: input, shape index: {}]   ;;  %s276_s1 = inlined_call_operand.hbm [shape: f32[16,128], index: 1, kind: input, shape index: {}]   ;;  %s277_s2 = inlined_call_operand.hbm [shape: f32[1,8,128], index: 2, kind: output, shape index: {}]  }
   0x1   :  { %8 = vsyncpa [#allocation6], 0 }
   0x2   :  { %9 = vsyncpa [#allocation4], 0  ;;  %s215_s9 = smov [#allocation2]   ;;  %s143_s13 = scalar_lea.hbm %s275_s0, 256 }
   0x3   :  { %s15_s10 = sshll.u32 %s215_s9, 4  ;;  %p144_p0 = scmp.ne.s32.totalorder %s275_s0, %s143_s13  ;;  %s16_s10 = int_to_ptr.vmem [resolvable:$true] %s15_s10 }
   0x4   :  { %p147_p1 = scmp.lt.u32.totalorder %s143_s13, %s275_s0 }
   0x6   :  { %p149_p2 = pnand %p147_p1, %p144_p0 }
   0x8   :  { %152 = shalt.err (!%p149_p2)
}
   0x9   :  { %s153_s18 = scalar_lea.vmem %s16_s10, 256  ;;  %p158_p4 = scmp.lt.s32.totalorder %s16_s10, %s16_s10 }
   0xa   :  { %p154_p3 = scmp.ne.s32.totalorder %s16_s10, %s153_s18  ;;  %p159_p5 = scmp.lt.s32.totalorder %s153_s18, %s153_s18 }
   0xc   :  { %p160_p6 = por %p159_p5, %p158_p4 }
   0xe   :  { %p161_p7 = pnand %p160_p6, %p154_p3 }
  0x10   :  { %164 = shalt.err (!%p161_p7)
}
  0x11   :  { %s216_s19 = smov 128   ;;  %s217_s20 = smov 8  }
  0x12   :  { %21 = dma.hbm_to_vmem [thread:$0]  %s275_s0, 256, %s16_s10, [#allocation3], %s216_s19, %s216_s19, %s217_s20  }
  0x13   :  { %s218_s23 = smov [#allocation5]   ;;  %s165_s27 = scalar_lea.hbm %s276_s1, 256 }
  0x14   :  { %s27_s24 = sshll.u32 %s218_s23, 4  ;;  %p166_p8 = scmp.ne.s32.totalorder %s276_s1, %s165_s27  ;;  %s28_s24 = int_to_ptr.vmem [resolvable:$true] %s27_s24 }
  0x15   :  { %p169_p9 = scmp.lt.u32.totalorder %s165_s27, %s276_s1 }
  0x17   :  { %p171_p10 = pnand %p169_p9, %p166_p8 }
  0x19   :  { %174 = shalt.err (!%p171_p10)
}
  0x1a   :  { %s175_s4 = scalar_lea.vmem %s28_s24, 256  ;;  %p180_p12 = scmp.lt.s32.totalorder %s28_s24, %s28_s24 }
  0x1b   :  { %p176_p11 = scmp.ne.s32.totalorder %s28_s24, %s175_s4  ;;  %p181_p13 = scmp.lt.s32.totalorder %s175_s4, %s175_s4 }
  0x1d   :  { %p182_p0 = por %p181_p13, %p180_p12 }
  0x1f   :  { %p183_p1 = pnand %p182_p0, %p176_p11 }
  0x21   :  { %186 = shalt.err (!%p183_p1)
}
  0x22   :  { %33 = dma.hbm_to_vmem [thread:$0]  %s276_s1, 256, %s28_s24, [#allocation6], %s216_s19, %s216_s19, %s217_s20  }
  0x23   :  { %209 = dma.done.wait [#allocation3], 256  }
  0x24   :  { %210 = vsyncadd [#allocation3], 4294967040 }
  0x25   :  { %211 = dma.done.wait [#allocation6], 256  }
  0x26   :  { %212 = vsyncadd [#allocation6], 4294967040  ;;  %v40_v0 = vld [vmem:[#allocation2] sm:$0xff]  ;;  %v41_v1 = vld [vmem:[#allocation2 + $0x8] sm:$0xff]  ;;  %s219_s1 = smov [#allocation7]  }
  0x27   :  { %v122_v2 = vmul.f32 -1.442695, %v40_v0  ;;  %v123_v3 = vmul.f32 -1.442695, %v41_v1  ;;  %v42_v10 = vld [vmem:[#allocation5] sm:$0xff]  ;;  %v43_v12 = vld [vmem:[#allocation5 + $0x8] sm:$0xff] }
  0x28   :  { %vm62_vm0 = vcmp.gt.f32.partialorder %v42_v10, 0.5  ;;  %vm63_vm1 = vcmp.gt.f32.partialorder %v43_v12, 0.5  ;;  %s112_s6 = sshll.u32 %s219_s1, 4  ;;  %s113_s6 = int_to_ptr.vmem [resolvable:$true] %s112_s6 }
  0x29   :  { %131 = vpow2.f32 %v122_v2  ;;  %s187_s9 = scalar_lea.vmem %s113_s6, 128  ;;  %p192_p3 = scmp.lt.s32.totalorder %s113_s6, %s113_s6 }
  0x2a   :  { %133 = vpow2.f32 %v123_v3  ;;  %p188_p2 = scmp.ne.s32.totalorder %s113_s6, %s187_s9  ;;  %p193_p4 = scmp.lt.s32.totalorder %s187_s9, %s187_s9 }
  0x2c   :  { %p194_p5 = por %p193_p4, %p192_p3 }
  0x2e   :  { %p195_p6 = pnand %p194_p5, %p188_p2 }
  0x33   :  { %v132_v4 = vpop.eup %131 }
  0x34   :  { %v134_v5 = vpop.eup %133  ;;  %v50_v6 = vadd.f32 1.0, %v132_v4 }
  0x35   :  { %v51_v7 = vadd.f32 1.0, %v134_v5 }
  0x36   :  { %135 = vrcp.f32 %v50_v6 }
  0x37   :  { %137 = vrcp.f32 %v51_v7 }
  0x40   :  { %v136_v8 = vpop.eup %135 }
  0x41   :  { %v138_v9 = vpop.eup %137  ;;  %v56_v11 = vsub.f32 1.0, %v136_v8 }
  0x42   :  { %v57_v13 = vsub.f32 1.0, %v138_v9 }
  0x43   :  { %v58_v14 = vadd.f32 0.05, %v56_v11 }
  0x44   :  { %v59_v15 = vadd.f32 0.05, %v57_v13 }
  0x45   :  { %v60_v16 = vmin.f32 %v58_v14, 1.0 }
  0x46   :  { %v61_v17 = vmin.f32 %v59_v15, 1.0 }
  0x47   :  { %v64_v18 = vsel %vm62_vm0, %v136_v8, %v60_v16  ;;  %v72_v21 = vsub.f32 1.0, %v60_v16 }
  0x48   :  { %v65_v19 = vsel %vm63_vm1, %v138_v9, %v61_v17  ;;  %v66_v20 = vmax.f32 %v64_v18, 1e-08  ;;  %v73_v23 = vsub.f32 1.0, %v61_v17 }
  0x49   :  { %v67_v22 = vmax.f32 %v65_v19, 1e-08  ;;  %v74_v24 = vmul.f32 %v72_v21, %v72_v21 }
  0x4a   :  { %139 = vlog2.f32 %v66_v20  ;;  %v75_v25 = vmul.f32 %v73_v23, %v73_v23 }
  0x4b   :  { %141 = vlog2.f32 %v67_v22  ;;  %v76_v26 = vmul.f32 %v74_v24, %v74_v24 }
  0x4c   :  { %v77_v27 = vmul.f32 %v75_v25, %v75_v25 }
  0x4d   :  { %v78_v29 = vsel %vm62_vm0, %v56_v11, %v76_v26 }
  0x4e   :  { %v79_v32 = vsel %vm63_vm1, %v57_v13, %v77_v27 }
  0x54   :  { %v140_v28 = vpop.eup %139 }
  0x55   :  { %v142_v30 = vpop.eup %141  ;;  %v69_v31 = vmul.f32 0.6931472, %v140_v28 }
  0x56   :  { %v71_v33 = vmul.f32 0.6931472, %v142_v30 }
  0x57   :  { %v80_v34 = vmul.f32 %v78_v29, %v69_v31 }
  0x58   :  { %v81_v35 = vmul.f32 %v79_v32, %v71_v33 }
  0x5a   :  { %v93_v36 = vadd.f32 %v81_v35, %v80_v34 }
  0x5c   :  { %94 = vadd.xlane.f32.xlu0 %v93_v36 }
  0xe9   :  { %v95_v37 = vpop.xlane.xlu0 %94 }
  0xea   :  { %v96_v38 = vrot.slane %v95_v37, 4 }
  0xec   :  { %v97_v39 = vadd.f32 %v96_v38, %v95_v37 }
  0xee   :  { %v98_v40 = vrot.slane %v97_v39, 2 }
  0xf0   :  { %v99_v41 = vadd.f32 %v98_v40, %v97_v39 }
  0xf2   :  { %v100_v42 = vrot.slane %v99_v41, 1 }
  0xf4   :  { %v101_v43 = vadd.f32 %v100_v42, %v99_v41 }
  0xf6   :  { %124 = vpush %v101_v43 }
 0x127   :  { %s125_s7 = spop %124 }
 0x128   :  { %s103_s8 = ssub.f32 0.0, %s125_s7 }
 0x12a   :  { %v104_v44 = vstv %s103_s8 }
 0x12b   :  { %105 = vst [vmem:[#allocation7] sm:$0xff] %v104_v44 }
 0x12c   :  { %198 = shalt.err (!%p195_p6)
}
 0x12d   :  { %s199_s12 = scalar_lea.hbm %s277_s2, 128 }
 0x12e   :  { %p200_p7 = scmp.ne.s32.totalorder %s277_s2, %s199_s12  ;;  %p203_p8 = scmp.lt.u32.totalorder %s199_s12, %s277_s2 }
 0x130   :  { %p205_p9 = pnand %p203_p8, %p200_p7 }
 0x132   :  { %208 = shalt.err (!%p205_p9)
}
 0x133   :  { %115 = dma.vmem_to_hbm [thread:$0]  %s113_s6, 128, %s277_s2, [#allocation4]  }
 0x134   :  { %213 = dma.done.wait [#allocation4], 128  }
 0x135   :  { %214 = vsyncadd [#allocation4], 4294967168 }
 0x136   :  { %119 = vsyncpa [#allocation3], 1 }
 0x137   :  { %120 = vsyncpa [#allocation6], 1 }
 0x138   :  { %121 = vsyncpa [#allocation4], 1 }

</bundles_post_ra>
